<compile_context>
chip_gen: v7x
topology: tpu7x:2x2x1
jax: 0.10.0
libtpu: 0.0.40
codegen_flags: <defaults>
</compile_context>

<pallas_src>
import functools

import jax
import jax.numpy as jnp
from jax.experimental import pallas as pl
from jax.experimental.pallas import tpu as pltpu


def embed_node_kernel(x_ref, m_ref, w1_ref, b1_ref, w2_ref, b2_ref, e_ref,
                      o_ref, *, compute_dtype):
    # x_ref: (tm_s, pack*node_dim) packed rows; everything below is lane-dense.
    x = x_ref[...].astype(compute_dtype)
    h1 = jnp.dot(x, w1_ref[...],
                 preferred_element_type=jnp.float32) + b1_ref[...]
    h1 = jax.nn.sigmoid(h1)                               # (tm_s, pack*hidden)
    h2 = jnp.dot(h1.astype(compute_dtype), w2_ref[...],
                 preferred_element_type=jnp.float32) + b2_ref[...]
    h2 = jnp.tanh(h2)                                     # (tm_s, pack*hidden)
    # Broadcast per-row mask (tm_s, pack) across each hidden-lane group via a
    # constant 0/1 matrix -> (tm_s, pack*hidden), fully lane-dense.
    mb = jnp.dot(m_ref[...], e_ref[...], preferred_element_type=jnp.float32)
    o_ref[...] = (h2 * mb).astype(o_ref.dtype)


def _round_up(x, m):
    return ((x + m - 1) // m) * m


@functools.partial(jax.jit,
                   static_argnames=("n_max", "node_dim", "hidden_dim",
                                    "compute_dtype", "out_dtype"))
def embed_node_forward(nodes, masks, w1, b1, w2, b2, *, n_max, node_dim,
                       hidden_dim, compute_dtype=jnp.float32, out_dtype=None):
    """nodes: (B, n_max, node_dim); masks: (B, n_max, 1) -> (B, n_max, hidden)."""
    batch = nodes.shape[0]
    m_rows = batch * n_max
    out_dtype = nodes.dtype if out_dtype is None else out_dtype

    # Lane-packing factor: fold `pack` logical rows into one 128-lane row.
    if hidden_dim <= 128 and 128 % hidden_dim == 0:
        pack = 128 // hidden_dim
    else:
        pack = 1
    lane_h = pack * hidden_dim          # 128 when hidden_dim divides 128
    lane_x = pack * node_dim

    # Pad rows only to a multiple of `pack` (usually a no-op) so the
    # byte-equivalent (rows, d) <-> (rows//pack, pack*d) reshape stays valid.
    # NO pad-to-tile-multiple: the grid is ragged; Pallas clips the last block
    # (tail reads feed garbage rows whose writes fall outside out_shape and
    # are discarded — each row is independent, so no contamination).
    m_rows_pad = _round_up(m_rows, pack)
    m_super = m_rows_pad // pack

    x = nodes.reshape(m_rows, node_dim)
    m = masks.reshape(m_rows, 1).astype(jnp.float32)
    if m_rows_pad != m_rows:
        x = jnp.pad(x, ((0, m_rows_pad - m_rows), (0, 0)))
        m = jnp.pad(m, ((0, m_rows_pad - m_rows), (0, 0)))
    # Same row-major bytes: (m_rows_pad, d) == (m_super, pack*d).
    x = x.reshape(m_super, lane_x)
    m = m.reshape(m_super, pack)

    # Sublane granularity of the output block: 8 (f32) / 16 (bf16) / 32 (8-bit).
    sub = {4: 8, 2: 16, 1: 32}[jnp.dtype(out_dtype).itemsize]
    # Big tiles to amortize the ~0.35us/step overhead (>=1 MiB moved per step),
    # but never fewer than 2 grid steps when there is enough work so v7x can
    # shard the "parallel" axis across its 2 TensorCores.
    desired = 2048
    half = _round_up((m_super + 1) // 2, sub)
    tm_s = max(sub, min(desired, half))
    grid = (pl.cdiv(m_super, tm_s),)

    # Block-diagonal weights so packed rows stay independent.
    eye = jnp.eye(pack, dtype=jnp.float32)
    w1_blk = jnp.kron(eye, w1.astype(jnp.float32)).astype(compute_dtype)
    w2_blk = jnp.kron(eye, w2.astype(jnp.float32)).astype(compute_dtype)
    b1_blk = jnp.tile(b1.astype(jnp.float32), pack).reshape(1, lane_h)
    b2_blk = jnp.tile(b2.astype(jnp.float32), pack).reshape(1, lane_h)
    e_blk = jnp.kron(eye, jnp.ones((1, hidden_dim), jnp.float32))  # (pack, lane_h)

    flops = 2 * m_super * (lane_x * lane_h + lane_h * lane_h + pack * lane_h)
    transcendentals = 2 * m_super * lane_h
    bytes_accessed = (x.dtype.itemsize * m_super * lane_x
                      + 4 * m_super * pack
                      + jnp.dtype(out_dtype).itemsize * m_super * lane_h
                      + jnp.dtype(compute_dtype).itemsize
                      * (lane_x * lane_h + lane_h * lane_h)
                      + 4 * (2 * lane_h + pack * lane_h))
    cost = pl.CostEstimate(flops=flops, transcendentals=transcendentals,
                           bytes_accessed=bytes_accessed)

    out2d = pl.pallas_call(
        functools.partial(embed_node_kernel, compute_dtype=compute_dtype),
        out_shape=jax.ShapeDtypeStruct((m_super, lane_h), out_dtype),
        grid_spec=pltpu.PrefetchScalarGridSpec(
            num_scalar_prefetch=0,
            grid=grid,
            in_specs=[
                pl.BlockSpec((tm_s, lane_x), lambda i: (i, 0)),    # packed x
                pl.BlockSpec((tm_s, pack), lambda i: (i, 0)),      # packed mask
                pl.BlockSpec((lane_x, lane_h), lambda i: (0, 0)),  # W1 (resident)
                pl.BlockSpec((1, lane_h), lambda i: (0, 0)),       # b1 (resident)
                pl.BlockSpec((lane_h, lane_h), lambda i: (0, 0)),  # W2 (resident)
                pl.BlockSpec((1, lane_h), lambda i: (0, 0)),       # b2 (resident)
                pl.BlockSpec((pack, lane_h), lambda i: (0, 0)),    # mask expander
            ],
            out_specs=pl.BlockSpec((tm_s, lane_h), lambda i: (i, 0)),
        ),
        compiler_params=pltpu.CompilerParams(
            dimension_semantics=("parallel",),
            vmem_limit_bytes=32 * 1024 * 1024),
        cost_estimate=cost,
    )(x, m, w1_blk, b1_blk, w2_blk, b2_blk, e_blk)

    # Free relayout back to logical rows; slice only if we actually padded.
    out = out2d.reshape(m_rows_pad, hidden_dim)
    if m_rows_pad != m_rows:
        out = out[:m_rows]
    return out.reshape(batch, n_max, hidden_dim)


def init_params(key, node_dim, hidden_dim):
    """Deterministic PyTorch-style (uniform +/- 1/sqrt(fan_in)) init."""
    k1, k2, k3, k4 = jax.random.split(key, 4)
    bound1 = 1.0 / jnp.sqrt(node_dim)
    bound2 = 1.0 / jnp.sqrt(hidden_dim)
    # Stored as (in, out) so kernel does x @ W (equivalent to x @ W_torch.T).
    w1 = jax.random.uniform(k1, (node_dim, hidden_dim), jnp.float32,
                            -bound1, bound1)
    b1 = jax.random.uniform(k2, (hidden_dim,), jnp.float32, -bound1, bound1)
    w2 = jax.random.uniform(k3, (hidden_dim, hidden_dim), jnp.float32,
                            -bound2, bound2)
    b2 = jax.random.uniform(k4, (hidden_dim,), jnp.float32, -bound2, bound2)
    return w1, b1, w2, b2


def reference_forward(nodes, masks, w1, b1, w2, b2):
    x = nodes.reshape(-1, nodes.shape[-1])
    h1 = jax.nn.sigmoid(x @ w1 + b1)
    h2 = jnp.tanh(h1 @ w2 + b2)
    return h2.reshape(nodes.shape[0], nodes.shape[1], -1) * masks


if __name__ == "__main__":
    node_dim, hidden_dim = 4, 32
    key = jax.random.PRNGKey(0)
    k_nodes, k_mask, k_params = jax.random.split(key, 3)
    w1, b1, w2, b2 = init_params(k_params, node_dim, hidden_dim)

    ok = True
    # Canonical small demo plus a row count that is not a multiple of 8 (or
    # pack) to exercise the ragged-grid / pad-to-pack path.
    for (batch_size, n_max) in [(2, 8), (3, 7)]:
        kn = jax.random.fold_in(k_nodes, n_max)
        km = jax.random.fold_in(k_mask, n_max)
        nodes = jax.random.normal(kn, (batch_size, n_max, node_dim), jnp.float32)
        masks = (jax.random.uniform(km, (batch_size, n_max, 1)) > 0.3
                 ).astype(jnp.float32)

        out = embed_node_forward(nodes, masks, w1, b1, w2, b2,
                                 n_max=n_max, node_dim=node_dim,
                                 hidden_dim=hidden_dim)
        out = jax.block_until_ready(out)

        ref = reference_forward(nodes, masks, w1, b1, w2, b2)
        ok &= out.shape == (batch_size, n_max, hidden_dim)
        ok &= bool(jnp.allclose(out, ref, atol=1e-5, rtol=1e-5))

    # Optional v6e/v7x fast path: bf16 MXU operands + bf16 HBM output storage.
    batch_size, n_max = 2, 8
    nodes = jax.random.normal(jax.random.fold_in(k_nodes, n_max),
                              (batch_size, n_max, node_dim), jnp.float32)
    masks = (jax.random.uniform(jax.random.fold_in(k_mask, n_max),
                                (batch_size, n_max, 1)) > 0.3).astype(jnp.float32)
    out_bf16 = embed_node_forward(nodes, masks, w1, b1, w2, b2,
                                  n_max=n_max, node_dim=node_dim,
                                  hidden_dim=hidden_dim,
                                  compute_dtype=jnp.bfloat16,
                                  out_dtype=jnp.bfloat16)
    out_bf16 = jax.block_until_ready(out_bf16)
    ref = reference_forward(nodes, masks, w1, b1, w2, b2)
    ok &= out_bf16.shape == (batch_size, n_max, hidden_dim)
    ok &= bool(jnp.allclose(out_bf16.astype(jnp.float32), ref, atol=3e-2))

    assert ok
    print("KERNEL_OK")
</pallas_src>

<mosaic_0001>
module attributes {stable_mosaic.version = 11 : i64} {
  func.func @embed_node_kernel(%arg0: i32, %arg1: memref<8x16xf32, #tpu.memory_space<vmem>>, %arg2: memref<8x4xf32, #tpu.memory_space<vmem>>, %arg3: memref<16x128xf32, #tpu.memory_space<vmem>>, %arg4: memref<1x128xf32, #tpu.memory_space<vmem>>, %arg5: memref<128x128xf32, #tpu.memory_space<vmem>>, %arg6: memref<1x128xf32, #tpu.memory_space<vmem>>, %arg7: memref<4x128xf32, #tpu.memory_space<vmem>>, %arg8: memref<8x128xf32, #tpu.memory_space<vmem>>) attributes {dimension_semantics = [#tpu.dimension_semantics<parallel>], iteration_bounds = array<i64: 1>, scalar_prefetch = 0 : i64, scratch_operands = 0 : i64, tpu.core_type = #tpu.core_type<tc>, window_params = [{transform_indices = @transform_0, window_bounds = array<i64: 8, 16>}, {transform_indices = @transform_1, window_bounds = array<i64: 8, 4>}, {pipeline_mode = #tpu.pipeline_mode<synchronous>, transform_indices = @transform_2, window_bounds = array<i64: 16, 128>}, {pipeline_mode = #tpu.pipeline_mode<synchronous>, transform_indices = @transform_3, window_bounds = array<i64: 1, 128>}, {pipeline_mode = #tpu.pipeline_mode<synchronous>, transform_indices = @transform_4, window_bounds = array<i64: 128, 128>}, {pipeline_mode = #tpu.pipeline_mode<synchronous>, transform_indices = @transform_5, window_bounds = array<i64: 1, 128>}, {pipeline_mode = #tpu.pipeline_mode<synchronous>, transform_indices = @transform_6, window_bounds = array<i64: 4, 128>}, {transform_indices = @transform_7, window_bounds = array<i64: 8, 128>}]} {
    %c0 = arith.constant 0 : index
    %c0_0 = arith.constant 0 : index
    %0 = vector.load %arg1[%c0, %c0_0] : memref<8x16xf32, #tpu.memory_space<vmem>>, vector<8x16xf32>
    %c0_1 = arith.constant 0 : index
    %c0_2 = arith.constant 0 : index
    %1 = vector.load %arg3[%c0_1, %c0_2] : memref<16x128xf32, #tpu.memory_space<vmem>>, vector<16x128xf32>
    %cst = arith.constant dense<0.000000e+00> : vector<8x128xf32>
    %2 = tpu.matmul %0, %1, %cst {dimension_numbers = #tpu.dot_dimension_numbers<[1], [0], [0], [1], [0, 0, 1, 1], [], []>} : vector<8x16xf32>, vector<16x128xf32>, vector<8x128xf32> -> vector<8x128xf32>
    %c0_3 = arith.constant 0 : index
    %c0_4 = arith.constant 0 : index
    %3 = vector.load %arg4[%c0_3, %c0_4] : memref<1x128xf32, #tpu.memory_space<vmem>>, vector<1x128xf32>
    %4 = vector.broadcast %3 : vector<1x128xf32> to vector<8x128xf32>
    %5 = arith.addf %2, %4 : vector<8x128xf32>
    %6 = arith.negf %5 : vector<8x128xf32>
    %7 = math.exp %6 : vector<8x128xf32>
    %cst_5 = arith.constant 1.000000e+00 : f32
    %8 = vector.broadcast %cst_5 : f32 to vector<8x128xf32>
    %9 = arith.addf %8, %7 : vector<8x128xf32>
    %10 = arith.divf %8, %9 : vector<8x128xf32>
    %c0_6 = arith.constant 0 : index
    %c0_7 = arith.constant 0 : index
    %11 = vector.load %arg5[%c0_6, %c0_7] : memref<128x128xf32, #tpu.memory_space<vmem>>, vector<128x128xf32>
    %cst_8 = arith.constant dense<0.000000e+00> : vector<8x128xf32>
    %12 = tpu.matmul %10, %11, %cst_8 {dimension_numbers = #tpu.dot_dimension_numbers<[1], [0], [0], [1], [0, 0, 1, 1], [], []>} : vector<8x128xf32>, vector<128x128xf32>, vector<8x128xf32> -> vector<8x128xf32>
    %c0_9 = arith.constant 0 : index
    %c0_10 = arith.constant 0 : index
    %13 = vector.load %arg6[%c0_9, %c0_10] : memref<1x128xf32, #tpu.memory_space<vmem>>, vector<1x128xf32>
    %14 = vector.broadcast %13 : vector<1x128xf32> to vector<8x128xf32>
    %15 = arith.addf %12, %14 : vector<8x128xf32>
    %16 = math.tanh %15 : vector<8x128xf32>
    %c0_11 = arith.constant 0 : index
    %c0_12 = arith.constant 0 : index
    %17 = vector.load %arg2[%c0_11, %c0_12] : memref<8x4xf32, #tpu.memory_space<vmem>>, vector<8x4xf32>
    %c0_13 = arith.constant 0 : index
    %c0_14 = arith.constant 0 : index
    %18 = vector.load %arg7[%c0_13, %c0_14] : memref<4x128xf32, #tpu.memory_space<vmem>>, vector<4x128xf32>
    %cst_15 = arith.constant dense<0.000000e+00> : vector<8x128xf32>
    %19 = tpu.matmul %17, %18, %cst_15 {dimension_numbers = #tpu.dot_dimension_numbers<[1], [0], [0], [1], [0, 0, 1, 1], [], []>} : vector<8x4xf32>, vector<4x128xf32>, vector<8x128xf32> -> vector<8x128xf32>
    %20 = arith.mulf %16, %19 : vector<8x128xf32>
    %c0_16 = arith.constant 0 : index
    %c0_17 = arith.constant 0 : index
    %21 = vector.load %arg8[%c0_16, %c0_17] : memref<8x128xf32, #tpu.memory_space<vmem>>, vector<8x128xf32>
    tpu.vector_store %arg8[%c0_16, %c0_17], %20 {strides = array<i32>} : memref<8x128xf32, #tpu.memory_space<vmem>>, vector<8x128xf32>,
    return
  }
  func.func @transform_0(%arg0: i32) -> (i32, i32) {
    %c0_i32 = arith.constant 0 : i32
    %c0_i32_0 = arith.constant 0 : i32
    return %arg0, %c0_i32 : i32, i32
  }
  func.func @transform_1(%arg0: i32) -> (i32, i32) {
    %c0_i32 = arith.constant 0 : i32
    %c0_i32_0 = arith.constant 0 : i32
    return %arg0, %c0_i32 : i32, i32
  }
  func.func @transform_2(%arg0: i32) -> (i32, i32) {
    %c0_i32 = arith.constant 0 : i32
    %c0_i32_0 = arith.constant 0 : i32
    %c0_i32_1 = arith.constant 0 : i32
    return %c0_i32, %c0_i32_0 : i32, i32
  }
  func.func @transform_3(%arg0: i32) -> (i32, i32) {
    %c0_i32 = arith.constant 0 : i32
    %c0_i32_0 = arith.constant 0 : i32
    %c0_i32_1 = arith.constant 0 : i32
    return %c0_i32, %c0_i32_0 : i32, i32
  }
  func.func @transform_4(%arg0: i32) -> (i32, i32) {
    %c0_i32 = arith.constant 0 : i32
    %c0_i32_0 = arith.constant 0 : i32
    %c0_i32_1 = arith.constant 0 : i32
    return %c0_i32, %c0_i32_0 : i32, i32
  }
  func.func @transform_5(%arg0: i32) -> (i32, i32) {
    %c0_i32 = arith.constant 0 : i32
    %c0_i32_0 = arith.constant 0 : i32
    %c0_i32_1 = arith.constant 0 : i32
    return %c0_i32, %c0_i32_0 : i32, i32
  }
  func.func @transform_6(%arg0: i32) -> (i32, i32) {
    %c0_i32 = arith.constant 0 : i32
    %c0_i32_0 = arith.constant 0 : i32
    %c0_i32_1 = arith.constant 0 : i32
    return %c0_i32, %c0_i32_0 : i32, i32
  }
  func.func @transform_7(%arg0: i32) -> (i32, i32) {
    %c0_i32 = arith.constant 0 : i32
    %c0_i32_0 = arith.constant 0 : i32
    return %arg0, %c0_i32 : i32, i32
  }
}

</mosaic_0001>

<bundles_post_ra>
// kernel: tile.13
= control target key start
LH: loop header
LB: loop body
LE: loop exit
PB: predicated region body
PF: predicated region fallthrough
CT: control target
= control target key end

     0   :  { %s22_s0 = inlined_call_operand.vmem [shape: f32[32], index: 0, kind: input, shape index: {}]   ;;  %s23_s1 = inlined_call_operand.vmem [shape: f32[4,32], index: 1, kind: output, shape index: {}]  }
   0x1   :  { %v4_v0 = vld [vmem:[%s22_s0] ss:$0 sm:$0xff] }
   0x2   :  { %5 = vst [vmem:[%s23_s1] sm:$0xf] %v4_v0 }

// kernel: tile.14
= control target key start
LH: loop header
LB: loop body
LE: loop exit
PB: predicated region body
PF: predicated region fallthrough
CT: control target
= control target key end

     0   :  { %vm7_vm0 = vcmask 261120   ;;  %s37_s8 = smov 32   ;;  %s38_s9 = smov 64   ;;  %vm13_vm1 = vcmask 1048320   ;;  %vm19_vm2 = vcmask 785920   ;;  %vm25_vm3 = vcmask 523520   ;;  %s55_s0 = inlined_call_operand.vmem [shape: f32[4,32], index: 0, kind: input, shape index: {}]   ;;  %s56_s1 = inlined_call_operand.vmem [shape: f32[1,128], index: 1, kind: output, shape index: {}]  }
   0x1   :  { %v4_v0 = vld [vmem:[%s55_s0] sm:$0xf]  ;;  %s36_s0 = smov 96  }
   0x2   :  { %5 = vst [vmem:[#allocation1] sm:$0xf] %v4_v0 }
   0x9   :  { %v10_v1 = vld [vmem:[#allocation1 + $0x3] sm:$0x1]   ;;  %v22_v2 = vld [vmem:[#allocation1 + $0x1] sm:$0x1]   ;;  %v6_v3 = vld [vmem:[#allocation1] sm:$0x1]  }
   0xa   :  { %11 = vrot.lane.b32.xlu0 %v10_v1, %s36_s0  ;;  %23 = vrot.lane.b32.xlu1 %v22_v2, %s37_s8  ;;  %v16_v4 = vld [vmem:[#allocation1 + $0x2] sm:$0x1]   ;;  %8 = vst.msk [vmem:[#allocation0] sm:$0x1] %vm7_vm0, %v6_v3  }
   0xe   :  { %17 = vrot.lane.b32.xlu0 %v16_v4, %s38_s9 }
  0x7c   :  { %v12_v5 = vpop.permute.xlu0 %11   ;;  %v24_v6 = vpop.permute.xlu1 %23  }
  0x7d   :  { %14 = vst.msk [vmem:[#allocation0] sm:$0x1] %vm13_vm1, %v12_v5  }
  0x80   :  { %v18_v7 = vpop.permute.xlu0 %17  }
  0x81   :  { %20 = vst.msk [vmem:[#allocation0] sm:$0x1] %vm19_vm2, %v18_v7  }
  0x82   :  { %26 = vst.msk [vmem:[#allocation0] sm:$0x1] %vm25_vm3, %v24_v6  }
  0x89   :  { %v30_v8 = vld [vmem:[#allocation0] sm:$0x1] }
  0x8a   :  { %32 = vst [vmem:[%s56_s1] sm:$0x1] %v30_v8 }

// kernel: embed_node_forward.1
= control target key start
LH: loop header
LB: loop body
LE: loop exit
PB: predicated region body
PF: predicated region fallthrough
CT: control target
= control target key end

     0   :  { %v442_v2 = vmov 0.0|0.0   ;;  %vm443_vm0 = vmmov 0   ;;  %v444_v4 = vmov 0.0   ;;  %vm36_vm1 = vcmask 130048   ;;  %s557_s0 = inlined_call_operand.vmem [shape: f32[4,16], index: 0, kind: input, shape index: {}]   ;;  %s558_s1 = inlined_call_operand.vmem [shape: f32[4,4], index: 1, kind: input, shape index: {}]   ;;  %s559_s2 = inlined_call_operand.vmem [shape: f32[16,128], index: 2, kind: input, shape index: {}]   ;;  %s560_s3 = inlined_call_operand.vmem [shape: f32[1,128], index: 3, kind: input, shape index: {}]   ;;  %s561_s4 = inlined_call_operand.vmem [shape: f32[128,128], index: 4, kind: input, shape index: {}]   ;;  %s562_s5 = inlined_call_operand.vmem [shape: f32[1,128], index: 5, kind: input, shape index: {}]   ;;  %s563_s6 = inlined_call_operand.vmem [shape: f32[4,128], index: 6, kind: input, shape index: {}]   ;;  %s564_s7 = inlined_call_operand.vmem [shape: f32[4,128], index: 7, kind: output, shape index: {}]  }
   0x1   :  { %v27_v0 = vld [vmem:[%s559_s2] sm:$0xff]  ;;  %v28_v1 = vld [vmem:[%s559_s2 + $0x8] sm:$0xff]  ;;  %406 = vmatprep.subr.bf16.mxu0 %v442_v2  ;;  %363 = vmatprep.mubr.msk.f32.mxu0 %vm443_vm0, %v444_v4  ;;  %v118_v9 = vld [vmem:[%s561_s4 + $0x10] sm:$0xff]  ;;  %vm216_vm2 = vcmask 1043456   ;;  %vm212_vm3 = vcmask 31744  }
   0x2   :  { %v407_v3 = vpack.c.bf16 %v28_v1, %v27_v0  ;;  %v116_v5 = vld [vmem:[%s561_s4] sm:$0xff]  ;;  %v117_v6 = vld [vmem:[%s561_s4 + $0x8] sm:$0xff]  ;;  %409 = vmatprep.subr.bf16.mxu1 %v442_v2  ;;  %398 = vmatprep.mubr.msk.f32.mxu1 %vm443_vm0, %v444_v4  ;;  %v119_v10 = vld [vmem:[%s561_s4 + $0x18] sm:$0xff] }
   0x3   :  { %v410_v7 = vpack.c.bf16 %v117_v6, %v116_v5  ;;  %v26_v8 = vld [vmem:[%s557_s0] sm:$0xff]  ;;  %v413_v11 = vpack.c.bf16 %v119_v10, %v118_v9  ;;  %v121_v13 = vld [vmem:[%s561_s4 + $0x28] sm:$0xff]  ;;  %v122_v15 = vld [vmem:[%s561_s4 + $0x30] sm:$0xff] }
   0x4   :  { %408 = vmatpush3.bf16.msra.mxu0 %v407_v3  ;;  %v120_v12 = vld [vmem:[%s561_s4 + $0x20] sm:$0xff]  ;;  %v123_v16 = vld [vmem:[%s561_s4 + $0x38] sm:$0xff]  ;;  %v125_v19 = vld [vmem:[%s561_s4 + $0x48] sm:$0xff] }
   0x5   :  { %411 = vmatpush3.bf16.msra.mxu1 %v410_v7  ;;  %401 = vmatprep.subr.mxu0 %v444_v4  ;;  %v416_v14 = vpack.c.bf16 %v121_v13, %v120_v12  ;;  %v419_v17 = vpack.c.bf16 %v123_v16, %v122_v15  ;;  %v124_v18 = vld [vmem:[%s561_s4 + $0x40] sm:$0xff]  ;;  %v126_v21 = vld [vmem:[%s561_s4 + $0x50] sm:$0xff]  ;;  %v127_v22 = vld [vmem:[%s561_s4 + $0x58] sm:$0xff] }
   0x6   :  { %412 = vmatprep.subr.bf16.mxu1 %v442_v2  ;;  %v422_v20 = vpack.c.bf16 %v125_v19, %v124_v18  ;;  %v425_v23 = vpack.c.bf16 %v127_v22, %v126_v21  ;;  %v128_v24 = vld [vmem:[%s561_s4 + $0x60] sm:$0xff]  ;;  %v129_v25 = vld [vmem:[%s561_s4 + $0x68] sm:$0xff]  ;;  %v130_v27 = vld [vmem:[%s561_s4 + $0x70] sm:$0xff] }
   0x7   :  { %364 = vmatmul.mubr.msk.f32.vlgmr.msra.gmra.mrb[0].mxu0 %vm36_vm1, %v26_v8  ;;  %v428_v26 = vpack.c.bf16 %v129_v25, %v128_v24  ;;  %v131_v28 = vld [vmem:[%s561_s4 + $0x78] sm:$0xff]  ;;  %v211_v30 = vld [vmem:[%s563_s6] sm:$0xf] }
   0x8   :  { %403 = vmatprep.mubr.msk.f32.mxu0 %vm443_vm0, %v444_v4  ;;  %v431_v29 = vpack.c.bf16 %v131_v28, %v130_v27  ;;  %v210_v31 = vld [vmem:[%s558_s1] sm:$0xff]  ;;  %402 = vmatpush3.msk.msra.mxu0 %vm216_vm2, %v211_v30 }
   0x9   :  { %414 = vmatpush3.bf16.msra.mxu1 %v413_v11  ;;  %v331_v32 = vld [vmem:[%s560_s3] ss:$0 sm:$0xff] }
   0xa   :  { %415 = vmatprep.subr.bf16.mxu1 %v442_v2  ;;  %v334_v42 = vld [vmem:[%s562_s5] ss:$0 sm:$0xff] }
   0xb   :  { %404 = vmatmul.mubr.msk.f32.vlgmr.msra.gmra.mrb[2].mxu0 %vm212_vm3, %v210_v31 }
   0xd   :  { %417 = vmatpush3.bf16.msra.mxu1 %v416_v14 }
   0xe   :  { %418 = vmatprep.subr.bf16.mxu1 %v442_v2 }
  0x11   :  { %420 = vmatpush3.bf16.msra.mxu1 %v419_v17 }
  0x12   :  { %421 = vmatprep.subr.bf16.mxu1 %v442_v2 }
  0x15   :  { %423 = vmatpush3.bf16.msra.mxu1 %v422_v20 }
  0x16   :  { %424 = vmatprep.subr.bf16.mxu1 %v442_v2 }
  0x19   :  { %426 = vmatpush3.bf16.msra.mxu1 %v425_v23 }
  0x1a   :  { %427 = vmatprep.subr.bf16.mxu1 %v442_v2 }
  0x1d   :  { %429 = vmatpush3.bf16.msra.mxu1 %v428_v26 }
  0x1e   :  { %430 = vmatprep.subr.bf16.mxu1 %v442_v2 }
  0x21   :  { %432 = vmatpush3.bf16.msra.mxu1 %v431_v29 }
  0xda   :  { %v106_v33 = vpop.f32.mrb[0].mxu0 }
  0xdb   :  { %v107_v34 = vadd.f32 %v331_v32, %v106_v33  ;;  %v365_v35 = vpop.f32.mrb[1].mxu0 }
  0xdd   :  { %v333_v36 = vmul.f32 -1.442695, %v107_v34 }
  0xde   :  { %v286_v40 = vpop.f32.mrb[2].mxu0 }
  0xdf   :  { %436 = vpow2.f32 %v333_v36  ;;  %v405_v41 = vpop.f32.mrb[3].mxu0 }
  0xe9   :  { %v437_v37 = vpop.eup %436 }
  0xea   :  { %v113_v38 = vadd.f32 1.0, %v437_v37 }
  0xec   :  { %438 = vrcp.f32 %v113_v38 }
  0xf6   :  { %v439_v39 = vpop.eup %438 }
  0xf7   :  { %399 = vmatmul.mubr.f32.vlgmr.msra.gmra.mrb[0].mxu1 %v439_v39 }
 0x1ca   :  { %v205_v43 = vpop.f32.mrb[0].mxu1 }
 0x1cb   :  { %v206_v44 = vadd.f32 %v334_v42, %v205_v43  ;;  %v400_v45 = vpop.f32.mrb[1].mxu1 }
 0x1cd   :  { %440 = vtanh.f32 %v206_v44 }
 0x1d7   :  { %v441_v46 = vpop.eup %440 }
 0x1d8   :  { %v290_v47 = vmul.f32 %v441_v46, %v286_v40 }
 0x1da   :  { %291 = vst [vmem:[#allocation2] sm:$0xff] %v290_v47 }
 0x1e1   :  { %v309_v48 = vld [vmem:[#allocation2] sm:$0xf] }
 0x1e2   :  { %310 = vst [vmem:[%s564_s7] sm:$0xf] %v309_v48 }

</bundles_post_ra>
